<compile_context>
chip_gen: v5e
topology: v5e:2x2
jax: 0.10.0
libtpu: 0.0.40
codegen_flags: <defaults>
</compile_context>

<pallas_src>
import jax
import jax.numpy as jnp
from jax.experimental import pallas as pl
from jax.experimental.pallas import tpu as pltpu


def _tpu_generation():
    try:
        kind = jax.devices()[0].device_kind.lower()
    except Exception:
        return "unknown"
    if "v5 lite" in kind or "v5e" in kind or "v5litepod" in kind:
        return "v5e"
    if "v6" in kind:
        return "v6e"
    if "v7" in kind:
        return "v7x"
    return "unknown"


_GEN = _tpu_generation()
# Generation-aware knobs (HBM-bandwidth-bound kernel: tile size + VMEM budget).
_TS_MAX = {"v7x": 16384, "v6e": 8192, "v5e": 8192}.get(_GEN, 8192)
_VMEM_CAP = {"v7x": 44 << 20, "v6e": 56 << 20, "v5e": 24 << 20}.get(_GEN, 32 << 20)
_TWO_CORES = _GEN == "v7x"   # v7x has 2 TensorCores per chip


def _largest_divisor_leq(n, cap):
    for d in range(max(1, min(n, cap)), 0, -1):
        if n % d == 0:
            return d
    return 1


def _choose_tiling(N, C_in, C_out, HW, itemsize):
    """Pick (batch block nb, spatial tile ts, vmem_limit_bytes)."""
    if HW > _TS_MAX:
        ts = (_TS_MAX // 512) * 512       # large multiple of 512, lane-dense
        nb = 1                            # spatial grid already has >= 2 steps
    else:
        ts = HW                           # full spatial row per step
        # Batch-block small images so each DMA is big enough to reach HBM BW.
        nb_cap = min(8, max(1, _TS_MAX // max(HW, 1)))
        if _TWO_CORES and N > 1:
            nb_cap = min(nb_cap, max(1, N // 2))   # keep >= 2 batch grid steps
        nb = _largest_divisor_leq(N, nb_cap)
        if _TWO_CORES and (N // nb) < 2 and HW >= 256:
            # N == 1: split the spatial row instead so both cores get work.
            ts = max(128, ((HW // 2 + 127) // 128) * 128)

    def _bytes(nb_, ts_):
        in_b = nb_ * C_in * ts_ * itemsize
        out_b = nb_ * C_out * ts_ * itemsize
        # Pallas double-buffers every pipelined block; weight/bias resident once.
        return 2 * (in_b + out_b) + (C_out * C_in + C_out) * 4

    budget = _VMEM_CAP - (2 << 20)
    while _bytes(nb, ts) > budget and (nb > 1 or (ts % 128 == 0 and ts > 128)):
        if nb > 1:
            nb = _largest_divisor_leq(N, nb - 1)
        else:
            ts = max(128, ((ts // 2) // 128) * 128)

    vmem_limit = int(min(_VMEM_CAP, max(2 * _bytes(nb, ts), 16 << 20)))
    return nb, ts, vmem_limit


def _outconv_kernel(x_ref, w_ref, b_ref, o_ref):
    # x_ref: (Nb, C_in, ts)   w_ref: (C_out, C_in)   b_ref: (C_out, 1)
    # o_ref: (Nb, C_out, ts)
    # Spatial tile (ts) is the lane axis for both loads and stores; the tiny
    # C_in contraction accumulates in f32 on the MXU.  Nb is a small static
    # constant (<= 8), so the Python loop fully unrolls.
    w = w_ref[...]
    b = b_ref[...]
    for n in range(x_ref.shape[0]):
        acc = jnp.dot(w, x_ref[n], preferred_element_type=jnp.float32)
        o_ref[n] = (acc + b).astype(o_ref.dtype)


@jax.jit
def out_conv(x_nchw, weight, bias):
    """1x1 Conv2d (OutConv.forward) via a Pallas matmul kernel.

    x_nchw: (N, C_in, H, W)
    weight: (C_out, C_in, 1, 1)   (PyTorch Conv2d layout)
    bias:   (C_out,)
    returns (N, C_out, H, W)
    """
    N, C_in, H, W = x_nchw.shape
    C_out = weight.shape[0]
    HW = H * W
    itemsize = jnp.dtype(x_nchw.dtype).itemsize

    # Free reshapes only — no transposes, no padding, no extra HBM round trips.
    x3d = x_nchw.reshape(N, C_in, HW)
    w2d = weight.reshape(C_out, C_in)
    b2d = bias.reshape(C_out, 1).astype(jnp.float32)

    nb, ts, vmem_limit = _choose_tiling(N, C_in, C_out, HW, itemsize)
    grid = (N // nb, pl.cdiv(HW, ts))

    out3d = pl.pallas_call(
        _outconv_kernel,
        out_shape=jax.ShapeDtypeStruct((N, C_out, HW), x_nchw.dtype),
        grid_spec=pltpu.PrefetchScalarGridSpec(
            num_scalar_prefetch=0,
            grid=grid,
            in_specs=[
                pl.BlockSpec((nb, C_in, ts), lambda n, s: (n, 0, s)),
                pl.BlockSpec((C_out, C_in), lambda n, s: (0, 0)),
                pl.BlockSpec((C_out, 1), lambda n, s: (0, 0)),
            ],
            out_specs=pl.BlockSpec((nb, C_out, ts), lambda n, s: (n, 0, s)),
        ),
        compiler_params=pltpu.CompilerParams(
            dimension_semantics=("parallel", "parallel"),
            vmem_limit_bytes=vmem_limit),
    )(x3d, w2d, b2d)

    return out3d.reshape(N, C_out, H, W)


if __name__ == "__main__":
    key = jax.random.PRNGKey(0)
    kx, kw, kb = jax.random.split(key, 3)

    N, C_in, C_out, H, W = 2, 4, 3, 16, 16

    x = jax.random.normal(kx, (N, C_in, H, W), dtype=jnp.float32)
    # Deterministic synthetic parameters (Conv2d(in_channels, out_channels, 1)):
    #   weight: (C_out, C_in, 1, 1), bias: (C_out,)
    fan_in = C_in  # kernel_size=1 -> fan_in = C_in * 1 * 1
    bound = 1.0 / (fan_in ** 0.5)
    weight = jax.random.uniform(kw, (C_out, C_in, 1, 1),
                                minval=-bound, maxval=bound, dtype=jnp.float32)
    bias = jax.random.uniform(kb, (C_out,),
                              minval=-bound, maxval=bound, dtype=jnp.float32)

    y = out_conv(x, weight, bias)
    jax.block_until_ready(y)

    # Pure-JAX reference check (1x1 conv == per-pixel linear over channels).
    ref = jnp.einsum("nchw,oc->nohw", x, weight.reshape(C_out, C_in)) \
          + bias.reshape(1, C_out, 1, 1)
    assert y.shape == (N, C_out, H, W)
    assert jnp.allclose(y, ref, atol=1e-5, rtol=1e-5)

    print("KERNEL_OK")
</pallas_src>

<mosaic_0001>
module attributes {stable_mosaic.version = 11 : i64} {
  func.func @_outconv_kernel(%arg0: i32, %arg1: i32, %arg2: memref<2x4x256xf32, #tpu.memory_space<vmem>>, %arg3: memref<3x4xf32, #tpu.memory_space<vmem>>, %arg4: memref<3x1xf32, #tpu.memory_space<vmem>>, %arg5: memref<2x3x256xf32, #tpu.memory_space<vmem>>) attributes {dimension_semantics = [#tpu.dimension_semantics<parallel>, #tpu.dimension_semantics<parallel>], iteration_bounds = array<i64: 1, 1>, scalar_prefetch = 0 : i64, scratch_operands = 0 : i64, tpu.core_type = #tpu.core_type<tc>, window_params = [{transform_indices = @transform_0, window_bounds = array<i64: 2, 4, 256>}, {pipeline_mode = #tpu.pipeline_mode<synchronous>, transform_indices = @transform_1, window_bounds = array<i64: 3, 4>}, {pipeline_mode = #tpu.pipeline_mode<synchronous>, transform_indices = @transform_2, window_bounds = array<i64: 3, 1>}, {transform_indices = @transform_3, window_bounds = array<i64: 2, 3, 256>}]} {
    %c0 = arith.constant 0 : index
    %c0_0 = arith.constant 0 : index
    %0 = vector.load %arg3[%c0, %c0_0] : memref<3x4xf32, #tpu.memory_space<vmem>>, vector<3x4xf32>
    %c0_1 = arith.constant 0 : index
    %c0_2 = arith.constant 0 : index
    %1 = vector.load %arg4[%c0_1, %c0_2] : memref<3x1xf32, #tpu.memory_space<vmem>>, vector<3x1xf32>
    %c0_3 = arith.constant 0 : index
    %c0_4 = arith.constant 0 : index
    %c0_5 = arith.constant 0 : index
    %2 = vector.load %arg2[%c0_3, %c0_4, %c0_5] : memref<2x4x256xf32, #tpu.memory_space<vmem>>, vector<1x4x256xf32>
    %3 = vector.shape_cast %2 : vector<1x4x256xf32> to vector<4x256xf32>
    %cst = arith.constant dense<0.000000e+00> : vector<3x256xf32>
    %4 = tpu.matmul %0, %3, %cst {dimension_numbers = #tpu.dot_dimension_numbers<[1], [0], [0], [1], [0, 0, 1, 1], [], []>} : vector<3x4xf32>, vector<4x256xf32>, vector<3x256xf32> -> vector<3x256xf32>
    %5 = vector.broadcast %1 : vector<3x1xf32> to vector<3x256xf32>
    %6 = arith.addf %4, %5 : vector<3x256xf32>
    %c0_6 = arith.constant 0 : index
    %c0_7 = arith.constant 0 : index
    %c0_8 = arith.constant 0 : index
    %7 = vector.load %arg5[%c0_6, %c0_7, %c0_8] : memref<2x3x256xf32, #tpu.memory_space<vmem>>, vector<1x3x256xf32>
    %8 = vector.shape_cast %7 : vector<1x3x256xf32> to vector<3x256xf32>
    %9 = vector.shape_cast %6 : vector<3x256xf32> to vector<1x3x256xf32>
    tpu.vector_store %arg5[%c0_6, %c0_7, %c0_8], %9 {strides = array<i32>} : memref<2x3x256xf32, #tpu.memory_space<vmem>>, vector<1x3x256xf32>,
    %c1 = arith.constant 1 : index
    %c0_9 = arith.constant 0 : index
    %c0_10 = arith.constant 0 : index
    %10 = vector.load %arg2[%c1, %c0_9, %c0_10] : memref<2x4x256xf32, #tpu.memory_space<vmem>>, vector<1x4x256xf32>
    %11 = vector.shape_cast %10 : vector<1x4x256xf32> to vector<4x256xf32>
    %cst_11 = arith.constant dense<0.000000e+00> : vector<3x256xf32>
    %12 = tpu.matmul %0, %11, %cst_11 {dimension_numbers = #tpu.dot_dimension_numbers<[1], [0], [0], [1], [0, 0, 1, 1], [], []>} : vector<3x4xf32>, vector<4x256xf32>, vector<3x256xf32> -> vector<3x256xf32>
    %13 = vector.broadcast %1 : vector<3x1xf32> to vector<3x256xf32>
    %14 = arith.addf %12, %13 : vector<3x256xf32>
    %c1_12 = arith.constant 1 : index
    %c0_13 = arith.constant 0 : index
    %c0_14 = arith.constant 0 : index
    %15 = vector.load %arg5[%c1_12, %c0_13, %c0_14] : memref<2x3x256xf32, #tpu.memory_space<vmem>>, vector<1x3x256xf32>
    %16 = vector.shape_cast %15 : vector<1x3x256xf32> to vector<3x256xf32>
    %17 = vector.shape_cast %14 : vector<3x256xf32> to vector<1x3x256xf32>
    tpu.vector_store %arg5[%c1_12, %c0_13, %c0_14], %17 {strides = array<i32>} : memref<2x3x256xf32, #tpu.memory_space<vmem>>, vector<1x3x256xf32>,
    return
  }
  func.func @transform_0(%arg0: i32, %arg1: i32) -> (i32, i32, i32) {
    %c0_i32 = arith.constant 0 : i32
    %c0_i32_0 = arith.constant 0 : i32
    return %arg0, %c0_i32, %arg1 : i32, i32, i32
  }
  func.func @transform_1(%arg0: i32, %arg1: i32) -> (i32, i32) {
    %c0_i32 = arith.constant 0 : i32
    %c0_i32_0 = arith.constant 0 : i32
    %c0_i32_1 = arith.constant 0 : i32
    return %c0_i32, %c0_i32_0 : i32, i32
  }
  func.func @transform_2(%arg0: i32, %arg1: i32) -> (i32, i32) {
    %c0_i32 = arith.constant 0 : i32
    %c0_i32_0 = arith.constant 0 : i32
    %c0_i32_1 = arith.constant 0 : i32
    return %c0_i32, %c0_i32_0 : i32, i32
  }
  func.func @transform_3(%arg0: i32, %arg1: i32) -> (i32, i32, i32) {
    %c0_i32 = arith.constant 0 : i32
    %c0_i32_0 = arith.constant 0 : i32
    return %arg0, %c0_i32, %arg1 : i32, i32, i32
  }
}

</mosaic_0001>

<bundles_post_ra>
// kernel: out_conv.1
= control target key start
LH: loop header
LB: loop body
LE: loop exit
PB: predicated region body
PF: predicated region fallthrough
CT: control target
= control target key end

     0   :  { %v154_v1 = vmov 0   ;;  %vm30_vm0 = vcmask 1043456   ;;  %vm26_vm1 = vcmask 31744   ;;  %s199_s0 = inlined_call_operand.vmem [shape: f32[2,4,256], index: 0, kind: input, shape index: {}]   ;;  %s200_s2 = inlined_call_operand.vmem [shape: f32[3,1], index: 2, kind: input, shape index: {}]   ;;  %s201_s1 = inlined_call_operand.vmem [shape: f32[3,4], index: 1, kind: input, shape index: {}]   ;;  %s202_s3 = inlined_call_operand.vmem [shape: f32[2,3,256], index: 3, kind: output, shape index: {}]  }
   0x1   :  { %v16_v0 = vld [vmem:[%s199_s0] sm:$0xff]  ;;  %153 = vset.pattern.permute.xlu0 %v154_v1  ;;  %v146_v3 = vld [vmem:[%s199_s0 + $0x8] sm:$0xff] }
   0x2   :  { %23 = vst [vmem:[#allocation1] ss:$2 sm:$0xff] %v16_v0  ;;  %v15_v2 = vld [vmem:[%s200_s2] sm:$0x7] }
   0x3   :  { %19 = vperm.xlu0 %153, %v15_v2   ;;  %v14_v6 = vld [vmem:[%s201_s1] sm:$0x7] }
   0x9   :  { %v24_v4 = vld.sshfl [vmem:[#allocation1] sm:$0xff pattern:$0x75316420]  ;;  %v25_v5 = vld.sshfl [vmem:[#allocation1 + $0x8] sm:$0xff pattern:$0x75316420] }
   0xa   :  { %84 = vst [vmem:[#allocation1] ss:$2 sm:$0xff] %v146_v3  ;;  %144 = vmatpush.msk.msra.mxu1 %vm30_vm0, %v25_v5  ;;  %142 = vmatpush.msk.msra.mxu0 %vm30_vm0, %v24_v4 }
   0xb   :  { %145 = vmatmul.msk.f32.vlgmr.msra.gmra.mxu1 %vm26_vm1, %v14_v6  ;;  %143 = vmatmul.msk.f32.vlgmr.msra.gmra.mxu0 %vm26_vm1, %v14_v6 }
  0x11   :  { %v85_v7 = vld.sshfl [vmem:[#allocation1] sm:$0xff pattern:$0x75316420]  ;;  %v86_v8 = vld.sshfl [vmem:[#allocation1 + $0x8] sm:$0xff pattern:$0x75316420] }
  0x12   :  { %147 = vmatpush.msk.msra.mxu2 %vm30_vm0, %v85_v7  ;;  %149 = vmatpush.msk.msra.mxu3 %vm30_vm0, %v86_v8 }
  0x13   :  { %148 = vmatmul.msk.f32.vlgmr.msra.gmra.mxu2 %vm26_vm1, %v14_v6  ;;  %150 = vmatmul.msk.f32.vlgmr.msra.gmra.mxu3 %vm26_vm1, %v14_v6 }
  0x75   :  { %v20_v9 = vpop.permute.xlu0 %19 }
  0x88   :  { %v72_v10 = vpop.f32.mrf.mxu1  ;;  %v52_v11 = vpop.f32.mrf.mxu0 }
  0x89   :  { %v73_v12 = vadd.f32 %v72_v10, %v20_v9  ;;  %v53_v13 = vadd.f32 %v52_v11, %v20_v9 }
  0x8b   :  { %v77_v14 = vrot.slane %v73_v12, 4 }
  0x8d   :  { %v78_v15 = vsel %vm30_vm0, %v53_v13, %v77_v14 }
  0x8e   :  { %80 = vst [vmem:[%s202_s3] sm:$0x77] %v78_v15 }
  0x96   :  { %v108_v16 = vpop.f32.mrf.mxu2  ;;  %v128_v17 = vpop.f32.mrf.mxu3 }
  0x97   :  { %v129_v18 = vadd.f32 %v128_v17, %v20_v9  ;;  %v109_v19 = vadd.f32 %v108_v16, %v20_v9 }
  0x99   :  { %v133_v20 = vrot.slane %v129_v18, 4 }
  0x9b   :  { %v134_v21 = vsel %vm30_vm0, %v109_v19, %v133_v20 }
  0x9c   :  { %151 = vst [vmem:[%s202_s3 + $0x8] sm:$0x77] %v134_v21 }

</bundles_post_ra>
